<compile_context>
chip_gen: v7x
topology: tpu7x:2x2x1
jax: 0.10.0
libtpu: 0.0.40
codegen_flags: <defaults>
</compile_context>

<pallas_src>
import jax
import jax.numpy as jnp
from jax.experimental import pallas as pl
from jax.experimental.pallas import tpu as pltpu


def addmm_kernel(x_ref, y_ref, z_ref, o_ref, acc_ref):
    k = pl.program_id(2)

    @pl.when(k == 0)
    def _():
        # Fold the bias into the accumulator init (broadcasts (1,tn)/(tm,1)/(1,1)
        # blocks up to the (tm, tn) accumulator tile).
        acc_ref[...] = jnp.broadcast_to(
            x_ref[...].astype(jnp.float32), acc_ref.shape
        )

    acc_ref[...] += jnp.dot(
        y_ref[...], z_ref[...], preferred_element_type=jnp.float32
    )

    @pl.when(k == pl.num_programs(2) - 1)
    def _():
        o_ref[...] = acc_ref[...].astype(o_ref.dtype)


def _fit_tile(dim, preferred, granule):
    """Largest legal tile <= preferred: full dim, or a granule-multiple dividing dim."""
    if dim <= preferred:
        return dim  # full extent is always a legal block shape
    t = (preferred // granule) * granule
    while t > granule and dim % t != 0:
        t -= granule
    if t < granule or dim % t != 0:
        return dim  # irregular dim: take it whole rather than emit masked tiles
    return t


def addmm(x, y, z, *, tm=256, tn=512, tk=512):
    """Pallas TPU implementation of torch.ops.aten.addmm(x, y, z) = x + y @ z."""
    M, K = y.shape
    K2, N = z.shape
    assert K == K2, "inner dimensions of y and z must match"

    # Normalize the bias to 2-D in its *native* dtype (no HBM broadcast / upcast).
    x2 = jnp.asarray(x)
    if x2.ndim == 0:
        x2 = x2.reshape(1, 1)
    elif x2.ndim == 1:
        x2 = x2.reshape(1, x2.shape[0])
    assert x2.shape in ((M, N), (1, N), (M, 1), (1, 1)), (
        f"bias shape {jnp.shape(x)} is not broadcastable to ({M}, {N})"
    )

    # Sub-32-bit dtypes pack rows along sublanes -> prefer tm % 16 == 0 for bf16.
    m_granule = 16 if jnp.dtype(y.dtype).itemsize < 4 else 8
    tm = _fit_tile(M, tm, m_granule)
    tn = _fit_tile(N, tn, 128)
    tk = _fit_tile(K, tk, 128)

    # Bias BlockSpec in its native (unbroadcast) layout; kernel broadcasts.
    if x2.shape == (M, N):
        x_spec = pl.BlockSpec((tm, tn), lambda i, j, k: (i, j))
    elif x2.shape == (1, N):
        x_spec = pl.BlockSpec((1, tn), lambda i, j, k: (0, j))
    elif x2.shape == (M, 1):
        x_spec = pl.BlockSpec((tm, 1), lambda i, j, k: (i, 0))
    else:  # (1, 1)
        x_spec = pl.BlockSpec((1, 1), lambda i, j, k: (0, 0))

    out_dtype = jnp.result_type(x2.dtype, y.dtype, z.dtype)
    grid = (pl.cdiv(M, tm), pl.cdiv(N, tn), pl.cdiv(K, tk))

    itemsize = lambda a: jnp.dtype(a.dtype).itemsize
    cost = pl.CostEstimate(
        flops=2 * M * N * K + M * N,
        transcendentals=0,
        bytes_accessed=(
            x2.size * itemsize(x2)
            + y.size * itemsize(y)
            + z.size * itemsize(z)
            + M * N * jnp.dtype(out_dtype).itemsize
        ),
    )

    return pl.pallas_call(
        addmm_kernel,
        out_shape=jax.ShapeDtypeStruct((M, N), out_dtype),
        grid_spec=pltpu.PrefetchScalarGridSpec(
            num_scalar_prefetch=0,
            grid=grid,
            in_specs=[
                x_spec,                                          # bias (native dtype)
                pl.BlockSpec((tm, tk), lambda i, j, k: (i, k)),  # y
                pl.BlockSpec((tk, tn), lambda i, j, k: (k, j)),  # z
            ],
            out_specs=pl.BlockSpec((tm, tn), lambda i, j, k: (i, j)),
            scratch_shapes=[pltpu.VMEM((tm, tn), jnp.float32)],
        ),
        compiler_params=pltpu.CompilerParams(
            dimension_semantics=("parallel", "parallel", "arbitrary"),
            vmem_limit_bytes=64 << 20,
        ),
        cost_estimate=cost,
    )(x2, y, z)


if __name__ == "__main__":
    key = jax.random.PRNGKey(0)
    kx, ky, kz, kb = jax.random.split(key, 4)

    M, K, N = 32, 64, 128
    y = jax.random.normal(ky, (M, K), dtype=jnp.float32)  # mat1
    z = jax.random.normal(kz, (K, N), dtype=jnp.float32)  # mat2

    # Case 1: full 2-D bias (the layout the original module's forward implies).
    x2d = jax.random.normal(kx, (M, N), dtype=jnp.float32)
    out2d = addmm(x2d, y, z)
    jax.block_until_ready(out2d)
    assert out2d.shape == (M, N)
    assert jnp.allclose(out2d, x2d + y @ z, atol=1e-4, rtol=1e-4)

    # Case 2: 1-D bias (row broadcast), exercises the no-HBM-broadcast path.
    x1d = jax.random.normal(kb, (N,), dtype=jnp.float32)
    out1d = addmm(x1d, y, z)
    jax.block_until_ready(out1d)
    assert jnp.allclose(out1d, x1d + y @ z, atol=1e-4, rtol=1e-4)

    print("KERNEL_OK")
</pallas_src>

<mosaic_0001>
module attributes {stable_mosaic.version = 11 : i64} {
  func.func @addmm_kernel(%arg0: i32, %arg1: i32, %arg2: i32, %arg3: memref<32x128xf32, #tpu.memory_space<vmem>>, %arg4: memref<32x64xf32, #tpu.memory_space<vmem>>, %arg5: memref<64x128xf32, #tpu.memory_space<vmem>>, %arg6: memref<32x128xf32, #tpu.memory_space<vmem>>, %arg7: memref<32x128xf32, #tpu.memory_space<vmem>>) attributes {dimension_semantics = [#tpu.dimension_semantics<parallel>, #tpu.dimension_semantics<parallel>, #tpu.dimension_semantics<arbitrary>], iteration_bounds = array<i64: 1, 1, 1>, scalar_prefetch = 0 : i64, scratch_operands = 1 : i64, tpu.core_type = #tpu.core_type<tc>, window_params = [{transform_indices = @transform_0, window_bounds = array<i64: 32, 128>}, {transform_indices = @transform_1, window_bounds = array<i64: 32, 64>}, {transform_indices = @transform_2, window_bounds = array<i64: 64, 128>}, {transform_indices = @transform_3, window_bounds = array<i64: 32, 128>}]} {
    %c0_i32 = arith.constant 0 : i32
    %0 = arith.cmpi eq, %arg2, %c0_i32 : i32
    %1 = arith.extui %0 : i1 to i32
    %c0_i32_0 = arith.constant 0 : i32
    %2 = arith.cmpi ne, %1, %c0_i32_0 : i32
    scf.if %2 {
      %c0_10 = arith.constant 0 : index
      %c0_11 = arith.constant 0 : index
      %12 = vector.load %arg3[%c0_10, %c0_11] : memref<32x128xf32, #tpu.memory_space<vmem>>, vector<32x128xf32>
      %c0_12 = arith.constant 0 : index
      %c0_13 = arith.constant 0 : index
      %13 = vector.load %arg7[%c0_12, %c0_13] : memref<32x128xf32, #tpu.memory_space<vmem>>, vector<32x128xf32>
      tpu.vector_store %arg7[%c0_12, %c0_13], %12 {strides = array<i32>} : memref<32x128xf32, #tpu.memory_space<vmem>>, vector<32x128xf32>,
    } else {
    }
    %c0 = arith.constant 0 : index
    %c0_1 = arith.constant 0 : index
    %3 = vector.load %arg7[%c0, %c0_1] : memref<32x128xf32, #tpu.memory_space<vmem>>, vector<32x128xf32>
    %c0_2 = arith.constant 0 : index
    %c0_3 = arith.constant 0 : index
    %4 = vector.load %arg4[%c0_2, %c0_3] : memref<32x64xf32, #tpu.memory_space<vmem>>, vector<32x64xf32>
    %c0_4 = arith.constant 0 : index
    %c0_5 = arith.constant 0 : index
    %5 = vector.load %arg5[%c0_4, %c0_5] : memref<64x128xf32, #tpu.memory_space<vmem>>, vector<64x128xf32>
    %cst = arith.constant dense<0.000000e+00> : vector<32x128xf32>
    %6 = tpu.matmul %4, %5, %cst {dimension_numbers = #tpu.dot_dimension_numbers<[1], [0], [0], [1], [0, 0, 1, 1], [], []>} : vector<32x64xf32>, vector<64x128xf32>, vector<32x128xf32> -> vector<32x128xf32>
    %7 = arith.addf %3, %6 : vector<32x128xf32>
    %c0_6 = arith.constant 0 : index
    %c0_7 = arith.constant 0 : index
    %8 = vector.load %arg7[%c0_6, %c0_7] : memref<32x128xf32, #tpu.memory_space<vmem>>, vector<32x128xf32>
    tpu.vector_store %arg7[%c0_6, %c0_7], %7 {strides = array<i32>} : memref<32x128xf32, #tpu.memory_space<vmem>>, vector<32x128xf32>,
    %c0_i32_8 = arith.constant 0 : i32
    %9 = arith.cmpi eq, %arg2, %c0_i32_8 : i32
    %10 = arith.extui %9 : i1 to i32
    %c0_i32_9 = arith.constant 0 : i32
    %11 = arith.cmpi ne, %10, %c0_i32_9 : i32
    scf.if %11 {
      %c0_10 = arith.constant 0 : index
      %c0_11 = arith.constant 0 : index
      %12 = vector.load %arg7[%c0_10, %c0_11] : memref<32x128xf32, #tpu.memory_space<vmem>>, vector<32x128xf32>
      %c0_12 = arith.constant 0 : index
      %c0_13 = arith.constant 0 : index
      %13 = vector.load %arg6[%c0_12, %c0_13] : memref<32x128xf32, #tpu.memory_space<vmem>>, vector<32x128xf32>
      tpu.vector_store %arg6[%c0_12, %c0_13], %12 {strides = array<i32>} : memref<32x128xf32, #tpu.memory_space<vmem>>, vector<32x128xf32>,
    } else {
    }
    return
  }
  func.func @transform_0(%arg0: i32, %arg1: i32, %arg2: i32) -> (i32, i32) {
    %c0_i32 = arith.constant 0 : i32
    return %arg0, %arg1 : i32, i32
  }
  func.func @transform_1(%arg0: i32, %arg1: i32, %arg2: i32) -> (i32, i32) {
    %c0_i32 = arith.constant 0 : i32
    return %arg0, %arg2 : i32, i32
  }
  func.func @transform_2(%arg0: i32, %arg1: i32, %arg2: i32) -> (i32, i32) {
    %c0_i32 = arith.constant 0 : i32
    return %arg2, %arg1 : i32, i32
  }
  func.func @transform_3(%arg0: i32, %arg1: i32, %arg2: i32) -> (i32, i32) {
    %c0_i32 = arith.constant 0 : i32
    return %arg0, %arg1 : i32, i32
  }
}

</mosaic_0001>

<bundles_post_ra>
// kernel: tpu_custom_call.1
= control target key start
LH: loop header
LB: loop body
LE: loop exit
PB: predicated region body
PF: predicated region fallthrough
CT: control target
= control target key end

     0   :  { %8 = vsyncpa [#allocation4], 0  ;;  %s478_s0 = inlined_call_operand.hbm [shape: f32[32,128], index: 0, kind: input, shape index: {}]   ;;  %s479_s1 = inlined_call_operand.hbm [shape: f32[32,64], index: 1, kind: input, shape index: {}]   ;;  %s480_s2 = inlined_call_operand.hbm [shape: f32[64,128], index: 2, kind: input, shape index: {}]   ;;  %s481_s3 = inlined_call_operand.hbm [shape: f32[32,128], index: 3, kind: output, shape index: {}]  }
   0x1   :  { %9 = vsyncpa [#allocation7], 0 }
   0x2   :  { %10 = vsyncpa [#allocation5], 0  ;;  %s381_s12 = smov [#allocation6]   ;;  %s382_s14 = smov [#allocation3]  }
   0x3   :  { %s28_s13 = sshll.u32 %s381_s12, 4  ;;  %s16_s15 = sshll.u32 %s382_s14, 4  ;;  %s29_s13 = int_to_ptr.vmem [resolvable:$true] %s28_s13  ;;  %s407_s15 = int_to_ptr.vmem [resolvable:$true] %s16_s15 }
   0x4   :  { %s287_s18 = scalar_lea.hbm %s479_s1, 512 }
   0x5   :  { %p288_p0 = scmp.ne.s32.totalorder %s479_s1, %s287_s18  ;;  %p291_p1 = scmp.lt.u32.totalorder %s287_s18, %s479_s1 }
   0x7   :  { %p293_p2 = pnand %p291_p1, %p288_p0 }
   0x9   :  { %296 = shalt.err (!%p293_p2)
}
   0xa   :  { %s297_s23 = scalar_lea.vmem %s29_s13, 512  ;;  %p302_p4 = scmp.lt.s32.totalorder %s29_s13, %s29_s13 }
   0xb   :  { %p298_p3 = scmp.ne.s32.totalorder %s29_s13, %s297_s23  ;;  %p303_p5 = scmp.lt.s32.totalorder %s297_s23, %s297_s23 }
   0xd   :  { %p304_p6 = por %p303_p5, %p302_p4 }
   0xf   :  { %p305_p7 = pnand %p304_p6, %p298_p3 }
  0x11   :  { %308 = shalt.err (!%p305_p7)
}
  0x12   :  { %s383_s24 = smov 128   ;;  %s384_s25 = smov 8  }
  0x13   :  { %34 = dma.hbm_to_vmem [thread:$0]  %s479_s1, 512, %s29_s13, [#allocation7], %s383_s24, %s383_s24, %s384_s25  }
  0x14   :  { %s309_s30 = scalar_lea.hbm %s478_s0, 512 }
  0x15   :  { %p310_p8 = scmp.ne.s32.totalorder %s478_s0, %s309_s30  ;;  %p313_p9 = scmp.lt.u32.totalorder %s309_s30, %s478_s0 }
  0x17   :  { %p315_p10 = pnand %p313_p9, %p310_p8 }
  0x19   :  { %318 = shalt.err (!%p315_p10)
}
  0x1a   :  { %s319_s8 = scalar_lea.vmem %s407_s15, 512  ;;  %p324_p12 = scmp.lt.s32.totalorder %s407_s15, %s407_s15 }
  0x1b   :  { %p320_p11 = scmp.ne.s32.totalorder %s407_s15, %s319_s8  ;;  %p325_p13 = scmp.lt.s32.totalorder %s319_s8, %s319_s8 }
  0x1d   :  { %p326_p0 = por %p325_p13, %p324_p12 }
  0x1f   :  { %p327_p1 = pnand %p326_p0, %p320_p11 }
  0x21   :  { %330 = shalt.err (!%p327_p1)
}
  0x22   :  { %22 = dma.hbm_to_vmem [thread:$0]  %s478_s0, 512, %s407_s15, [#allocation4], %s383_s24, %s383_s24, %s384_s25  }
  0x23   :  { %s385_s10 = smov [#allocation8]   ;;  %s331_s14 = scalar_lea.hbm %s480_s2, 1024 }
  0x24   :  { %s40_s11 = sshll.u32 %s385_s10, 4  ;;  %p332_p2 = scmp.ne.s32.totalorder %s480_s2, %s331_s14  ;;  %s41_s11 = int_to_ptr.vmem [resolvable:$true] %s40_s11 }
  0x25   :  { %p335_p3 = scmp.lt.u32.totalorder %s331_s14, %s480_s2 }
  0x27   :  { %p337_p4 = pnand %p335_p3, %p332_p2 }
  0x29   :  { %340 = shalt.err (!%p337_p4)
}
  0x2a   :  { %s341_s20 = scalar_lea.vmem %s41_s11, 1024  ;;  %p346_p6 = scmp.lt.s32.totalorder %s41_s11, %s41_s11 }
  0x2b   :  { %p342_p5 = scmp.ne.s32.totalorder %s41_s11, %s341_s20  ;;  %p347_p7 = scmp.lt.s32.totalorder %s341_s20, %s341_s20 }
  0x2d   :  { %p348_p8 = por %p347_p7, %p346_p6 }
  0x2f   :  { %p349_p9 = pnand %p348_p8, %p342_p5 }
  0x31   :  { %352 = shalt.err (!%p349_p9)
}
  0x32   :  { %46 = dma.hbm_to_vmem [thread:$0]  %s480_s2, 1024, %s41_s11, [#allocation7], %s383_s24, %s383_s24, %s384_s25  }
  0x33   :  { %375 = dma.done.wait [#allocation4], 512  }
  0x34   :  { %376 = vsyncadd [#allocation4], 4294966784 }
  0x35   :  { %377 = dma.done.wait [#allocation7], 1536  }
  0x36   :  { %378 = vsyncadd [#allocation7], 4294965760  ;;  %v76_v0 = vld [vmem:[#allocation8] sm:$0xff]  ;;  %v77_v1 = vld [vmem:[#allocation8 + $0x8] sm:$0xff]  ;;  %vm84_vm0 = vcmask 523264   ;;  %s386_s2 = smov [#allocation9]  }
  0x37   :  { %v78_v2 = vld [vmem:[#allocation8 + $0x10] sm:$0xff]  ;;  %v257_v3 = vpack.c.bf16 %v77_v1, %v76_v0  ;;  %v79_v4 = vld [vmem:[#allocation8 + $0x18] sm:$0xff]  ;;  %v80_v6 = vld [vmem:[#allocation8 + $0x20] sm:$0xff]  ;;  %s206_s21 = sshll.u32 %s386_s2, 4  ;;  %s207_s21 = int_to_ptr.vmem [resolvable:$true] %s206_s21 }
  0x38   :  { %v261_v5 = vpack.c.bf16 %v79_v4, %v78_v2  ;;  %v81_v7 = vld [vmem:[#allocation8 + $0x28] sm:$0xff]  ;;  %v72_v8 = vld [vmem:[#allocation6] sm:$0xff]  ;;  %v74_v9 = vld [vmem:[#allocation6 + $0x10] sm:$0xff]  ;;  %s353_s22 = scalar_lea.vmem %s207_s21, 512  ;;  %p358_p11 = scmp.lt.s32.totalorder %s207_s21, %s207_s21 }
  0x39   :  { %258 = vmatprep.subr.bf16.mxu0 %v257_v3  ;;  %273 = vmatprep.subr.bf16.mxu1 %v257_v3  ;;  %v265_v10 = vpack.c.bf16 %v81_v7, %v80_v6  ;;  %v82_v11 = vld [vmem:[#allocation8 + $0x30] sm:$0xff]  ;;  %v83_v12 = vld [vmem:[#allocation8 + $0x38] sm:$0xff]  ;;  %v73_v14 = vld [vmem:[#allocation6 + $0x8] sm:$0xff]  ;;  %p354_p10 = scmp.ne.s32.totalorder %s207_s21, %s353_s22  ;;  %p359_p12 = scmp.lt.s32.totalorder %s353_s22, %s353_s22 }
  0x3a   :  { %260 = vmatpush3.bf16.msra.mxu0 %v257_v3  ;;  %277 = vmatpush3.bf16.msra.mxu1 %v257_v3  ;;  %v269_v13 = vpack.c.bf16 %v83_v12, %v82_v11  ;;  %v75_v15 = vld [vmem:[#allocation6 + $0x18] sm:$0xff]  ;;  %v61_v16 = vld [vmem:[#allocation3 + $0x8] sm:$0xff]  ;;  %v60_v18 = vld [vmem:[#allocation3] sm:$0xff] }
  0x3b   :  { %262 = vmatprep.subr.bf16.mxu0 %v261_v5  ;;  %274 = vmatprep.subr.bf16.mxu1 %v261_v5  ;;  %v63_v17 = vld [vmem:[#allocation3 + $0x18] sm:$0xff]  ;;  %v62_v19 = vld [vmem:[#allocation3 + $0x10] sm:$0xff]  ;;  %p360_p13 = por %p359_p12, %p358_p11 }
  0x3c   :  { %251 = vmatprep.mubr.msk.f32.mxu0 %vm84_vm0, %v72_v8  ;;  %254 = vmatprep.mubr.msk.f32.mxu1 %vm84_vm0, %v74_v9 }
  0x3d   :  { %p361_p0 = pnand %p360_p13, %p354_p10 }
  0x3e   :  { %264 = vmatpush3.bf16.msra.mxu0 %v261_v5  ;;  %278 = vmatpush3.bf16.msra.mxu1 %v261_v5 }
  0x3f   :  { %266 = vmatprep.subr.bf16.mxu0 %v265_v10  ;;  %275 = vmatprep.subr.bf16.mxu1 %v265_v10 }
  0x42   :  { %268 = vmatpush3.bf16.msra.mxu0 %v265_v10  ;;  %279 = vmatpush3.bf16.msra.mxu1 %v265_v10 }
  0x43   :  { %270 = vmatprep.subr.bf16.mxu0 %v269_v13  ;;  %276 = vmatprep.subr.bf16.mxu1 %v269_v13 }
  0x46   :  { %272 = vmatpush3.bf16.msra.mxu0 %v269_v13  ;;  %280 = vmatpush3.bf16.msra.mxu1 %v269_v13 }
  0x49   :  { %252 = vmatmul.mubr.msk.f32.vlgmr.msra.gmra.mrb[0].mxu0 %vm84_vm0, %v73_v14  ;;  %255 = vmatmul.mubr.msk.f32.vlgmr.msra.gmra.mrb[0].mxu1 %vm84_vm0, %v75_v15 }
 0x11c   :  { %v253_v20 = vpop.f32.mrb[0].mxu0  ;;  %v256_v21 = vpop.f32.mrb[0].mxu1 }
 0x11d   :  { %v183_v22 = vadd.f32 %v253_v20, %v61_v16  ;;  %v185_v23 = vadd.f32 %v256_v21, %v63_v17  ;;  %v163_v24 = vpop.f32.mrb[1].mxu0  ;;  %v173_v25 = vpop.f32.mrb[1].mxu1 }
 0x11e   :  { %v182_v26 = vadd.f32 %v163_v24, %v60_v18  ;;  %v184_v27 = vadd.f32 %v173_v25, %v62_v19 }
 0x11f   :  { %198 = vst [vmem:[#allocation9 + $0x8] sm:$0xff] %v183_v22  ;;  %200 = vst [vmem:[#allocation9 + $0x18] sm:$0xff] %v185_v23 }
 0x120   :  { %197 = vst [vmem:[#allocation9] sm:$0xff] %v182_v26  ;;  %199 = vst [vmem:[#allocation9 + $0x10] sm:$0xff] %v184_v27 }
 0x121   :  { %364 = shalt.err (!%p361_p0)
}
 0x122   :  { %s365_s27 = scalar_lea.hbm %s481_s3, 512 }
 0x123   :  { %p366_p1 = scmp.ne.s32.totalorder %s481_s3, %s365_s27  ;;  %p369_p2 = scmp.lt.u32.totalorder %s365_s27, %s481_s3 }
 0x125   :  { %p371_p3 = pnand %p369_p2, %p366_p1 }
 0x127   :  { %374 = shalt.err (!%p371_p3)
}
 0x128   :  { %212 = dma.vmem_to_hbm [thread:$0]  %s207_s21, 512, %s481_s3, [#allocation5], %s383_s24, %s383_s24, %s384_s25  }
 0x129   :  { %379 = dma.done.wait [#allocation5], 512  }
 0x12a   :  { %380 = vsyncadd [#allocation5], 4294966784 }
 0x12b   :  { %216 = vsyncpa [#allocation4], 1 }
 0x12c   :  { %217 = vsyncpa [#allocation7], 1 }
 0x12d   :  { %218 = vsyncpa [#allocation5], 1 }

</bundles_post_ra>
